<compile_context>
chip_gen: v7x
topology: tpu7x:2x2x1
jax: 0.10.0
libtpu: 0.0.40
codegen_flags: <defaults>
</compile_context>

<pallas_src>
import functools
import math

import numpy as np

import jax
import jax.numpy as jnp
from jax import lax
from jax.experimental import pallas as pl
from jax.experimental.pallas import tpu as pltpu


def _svls_taps(ksize, sigma):
    """SVLS taps, exactly as PyTorch get_gaussian_kernel_2d + get_svls_filter_2d.

    Returns (k_eff, svls_kernel) as numpy float32:
      svls_kernel : the depthwise-conv weight
      k_eff       : svls_kernel / svls_kernel.sum()  (forward divides conv
                    output by the kernel sum)
    """
    ax = np.arange(ksize, dtype=np.float32)
    xg = np.tile(ax, (ksize, 1))          # x_grid[i, j] = j
    yg = xg.T                             # y_grid[i, j] = i
    mean = (ksize - 1) / 2.0
    var = float(sigma) ** 2.0
    g = (1.0 / (2.0 * math.pi * var + 1e-16)) * np.exp(
        -((xg - mean) ** 2.0 + (yg - mean) ** 2.0) / (2.0 * var + 1e-16))
    g = (g / g.sum()).astype(np.float32)
    c = ksize // 2
    neighbors_sum = np.float32(1.0) - g[c, c] + np.float32(1e-16)
    g[c, c] = neighbors_sum
    svls_kernel = (g / neighbors_sum).astype(np.float32)
    k_eff = (svls_kernel / svls_kernel.sum()).astype(np.float32)
    return k_eff, svls_kernel


def _curr_svls_kernel(logits_ref, teacher_ref, nlab_ref, out_ref, *,
                      k_eff, mu, inv_t):
    """One (batch, pixel-tile) step.

    logits_ref : VMEM (1, C, T)   student logits (native dtype)
    teacher_ref: VMEM (1, C, T)   teacher logits (native dtype)
    nlab_ref   : VMEM (1, K2, T)  int8 labels of the K2 spatial neighbours
    out_ref    : VMEM (1, 2, T) f32  row 0 = per-pixel SVLS loss,
                                     row 1 = per-pixel curriculum weight
    k_eff/mu/inv_t: trace-time Python constants.
    """
    x = logits_ref[0].astype(jnp.float32)        # (C, T)
    t = teacher_ref[0].astype(jnp.float32)       # (C, T)
    nl = nlab_ref[0].astype(jnp.int32)           # (K2, T)

    C, T = x.shape
    K2 = nl.shape[0]

    cls = lax.broadcasted_iota(jnp.int32, (C, T), 0)     # class ids per row

    # Smoothed per-class label weights (replaces one-hot + depthwise conv):
    #   wsm[c, px] = sum_o k_eff[o] * (label_of_neighbour_o[px] == c)
    wsm = jnp.zeros((C, T), jnp.float32)
    for o in range(K2):
        wsm = wsm + jnp.where(cls == nl[o:o + 1, :],
                              jnp.float32(k_eff[o]), jnp.float32(0.0))

    # sum_c wsm == sum(k_eff) == 1, hence
    #   loss = -sum_c wsm * log_softmax(x) = logsumexp(x) - sum_c wsm * x
    # (log_softmax is never materialized).
    xm = jnp.max(x, axis=0, keepdims=True)                               # (1,T)
    lse = xm + jnp.log(jnp.sum(jnp.exp(x - xm), axis=0, keepdims=True))  # (1,T)
    loss = lse - jnp.sum(wsm * x, axis=0, keepdims=True)                 # (1,T)

    # Curriculum weight: softmax(teacher * inv_t)[true class] >= mu,
    # evaluated divide-free as  exp_true >= mu * sum(exp).
    ts = t * jnp.float32(inv_t)
    te = jnp.exp(ts - jnp.max(ts, axis=0, keepdims=True))                # (C,T)
    tden = jnp.sum(te, axis=0, keepdims=True)                            # (1,T)
    center = nl[K2 // 2:K2 // 2 + 1, :]                                  # (1,T)
    picked_te = jnp.sum(jnp.where(cls == center, te, jnp.float32(0.0)),
                        axis=0, keepdims=True)                           # (1,T)
    w = (picked_te >= jnp.float32(mu) * tden).astype(jnp.float32)        # (1,T)

    out_ref[0, 0:1, :] = loss
    out_ref[0, 1:2, :] = w


def _padded_rows(rows, itemsize):
    """Sublane-padded row count for a dtype of the given itemsize."""
    unit = 8 * max(1, 4 // int(itemsize))
    return -(-rows // unit) * unit


def curriculum_ce_loss_with_svls(outputs, teacher_out, labels, sigma, mu, opt_t,
                                 *, num_classes, ksize=3):
    """outputs/teacher_out: (N,C,H,W); labels: (N,H,W) int. Returns scalar f32."""
    N, C, H, W = outputs.shape
    assert C == num_classes
    assert ksize % 2 == 1
    assert num_classes <= 127, "int8 neighbour labels require num_classes <= 127"
    HW = H * W
    K2 = ksize * ksize
    pad = ksize // 2

    # Static hyper-parameters baked in as trace-time constants.
    k_eff_np, _ = _svls_taps(ksize, sigma)
    k_eff = tuple(float(v) for v in k_eff_np.reshape(-1))
    mu_c = float(mu)
    inv_t_c = float(1.0 / float(opt_t))

    # int8 neighbour-label maps with replicate ("edge") padding: 9 B/px of HBM
    # instead of 36 B/px at int32; replaces the one-hot + depthwise conv.
    # TODO(synk): eliminate nlab entirely by passing a single padded label map
    # and deriving the 9 neighbours in-kernel with halo tiles + pltpu.roll.
    lab = labels.astype(jnp.int8)
    lab_p = jnp.pad(lab, ((0, 0), (pad, pad), (pad, pad)), mode="edge")
    shifts = [lab_p[:, dy:dy + H, dx:dx + W]
              for dy in range(ksize) for dx in range(ksize)]
    nlab = jnp.stack(shifts, axis=1).reshape(N, K2, HW)

    # Free reshapes of the big tensors (no transpose, no dtype copy, no pad).
    x = outputs.reshape(N, C, HW)
    t = teacher_out.reshape(N, C, HW)

    # Generation-aware VMEM budget: double-buffered inputs/outputs (with
    # sublane padding) + ~6 f32 (C, T) in-kernel temporaries.
    try:
        vmem_cap = int(pltpu.get_tpu_info().vmem_capacity_bytes)
    except Exception:  # conservative fallback (v7x per-core size)
        vmem_cap = 64 * 1024 * 1024
    budget = int(vmem_cap * 0.40)

    x_isz = jnp.dtype(outputs.dtype).itemsize
    t_isz = jnp.dtype(teacher_out.dtype).itemsize
    in_bpp = (_padded_rows(C, x_isz) * x_isz
              + _padded_rows(C, t_isz) * t_isz
              + _padded_rows(K2, 1) * 1)
    out_bpp = _padded_rows(2, 4) * 4
    tmp_bpp = 6 * _padded_rows(C, 4) * 4
    bytes_per_px = 2 * (in_bpp + out_bpp) + tmp_bpp

    max_tile = max(128, min(32768, (budget // bytes_per_px) // 128 * 128))
    if HW <= max_tile:
        tile_px = HW
        # Keep >= 2 pixel tiles when N is small so both v7x TensorCores get work.
        if N < 4 and HW >= 256:
            tile_px = -(-pl.cdiv(HW, 2) // 128) * 128
    else:
        tile_px = max_tile
    num_t = pl.cdiv(HW, tile_px)

    vmem_limit = int(min(vmem_cap * 0.75,
                         max(32 * 1024 * 1024, 2 * bytes_per_px * tile_px)))

    kernel = functools.partial(_curr_svls_kernel,
                               k_eff=k_eff, mu=mu_c, inv_t=inv_t_c)

    out = pl.pallas_call(
        kernel,
        out_shape=jax.ShapeDtypeStruct((N, 2, HW), jnp.float32),
        grid=(N, num_t),
        in_specs=[
            pl.BlockSpec((1, C, tile_px), lambda n, i: (n, 0, i)),    # student
            pl.BlockSpec((1, C, tile_px), lambda n, i: (n, 0, i)),    # teacher
            pl.BlockSpec((1, K2, tile_px), lambda n, i: (n, 0, i)),   # nbr labels
        ],
        out_specs=pl.BlockSpec((1, 2, tile_px), lambda n, i: (n, 0, i)),
        compiler_params=pltpu.CompilerParams(
            dimension_semantics=("parallel", "parallel"),
            vmem_limit_bytes=vmem_limit),
    )(x, t, nlab)

    loss_px = out[:, 0, :]            # (N, HW) per-pixel SVLS loss
    w_px = out[:, 1, :]               # (N, HW) per-pixel curriculum weight

    # Literal PyTorch broadcast (N,1,H,W)*(N,H,W) -> (N,N,H,W), then .mean():
    #   mean = sum_px (sum_i w[i,px]) * (sum_j loss[j,px]) / (N*N*HW)
    w_sum = jnp.sum(w_px, axis=0)
    l_sum = jnp.sum(loss_px, axis=0)
    return jnp.sum(w_sum * l_sum) / jnp.float32(N * N * HW)


def _reference(outputs, teacher_out, labels, sigma, mu, opt_t, num_classes,
               ksize=3):
    """Pure-JAX literal translation of the PyTorch forward (for verification)."""
    N, C, H, W = outputs.shape
    pad = ksize // 2
    _, svls_k = _svls_taps(ksize, sigma)
    svls_k = jnp.asarray(svls_k)
    oh = jax.nn.one_hot(labels.astype(jnp.int32), num_classes, axis=-1)
    oh = jnp.transpose(oh, (0, 3, 1, 2)).astype(jnp.float32)           # (N,C,H,W)
    ohp = jnp.pad(oh, ((0, 0), (0, 0), (pad, pad), (pad, pad)), mode="edge")
    wgt = jnp.tile(svls_k.reshape(1, 1, ksize, ksize),
                   (num_classes, 1, 1, 1)).astype(jnp.float32)
    conv = lax.conv_general_dilated(
        ohp, wgt, window_strides=(1, 1), padding="VALID",
        dimension_numbers=("NCHW", "OIHW", "NCHW"),
        feature_group_count=num_classes)
    svls_labels = conv / jnp.sum(svls_k)
    logp = jax.nn.log_softmax(outputs.astype(jnp.float32), axis=1)
    svls_loss_px = jnp.sum(-svls_labels * logp, axis=1)                # (N,H,W)
    conf = jax.nn.softmax(teacher_out.astype(jnp.float32) / opt_t, axis=1)
    true_prob = jnp.max(conf * oh, axis=1, keepdims=True)              # (N,1,H,W)
    weights = jnp.where(true_prob >= mu, 1.0, 0.0).astype(jnp.float32)
    # NumPy broadcasting matches PyTorch: (N,1,H,W)*(N,H,W) -> (N,N,H,W).
    return jnp.mean(weights * svls_loss_px)


if __name__ == "__main__":
    key = jax.random.PRNGKey(0)
    k1, k2, k3 = jax.random.split(key, 3)
    N, C, H, W = 2, 4, 16, 16
    sigma, mu, opt_t = 1.0, 0.2, 1.5

    outputs = jax.random.normal(k1, (N, C, H, W), dtype=jnp.float32)
    teacher_out = jax.random.normal(k2, (N, C, H, W), dtype=jnp.float32)
    labels = jax.random.randint(k3, (N, H, W), 0, C, dtype=jnp.int32)

    loss = curriculum_ce_loss_with_svls(outputs, teacher_out, labels,
                                        sigma, mu, opt_t, num_classes=C)
    loss = jax.block_until_ready(loss)

    ref = _reference(outputs, teacher_out, labels, sigma, mu, opt_t, C)
    assert jnp.allclose(loss, ref, rtol=2e-5, atol=1e-5), (loss, ref)
    print("KERNEL_OK")
</pallas_src>

<mosaic_0001>
module attributes {stable_mosaic.version = 11 : i64} {
  func.func @_curr_svls_kernel(%arg0: i32, %arg1: i32, %arg2: memref<1x4x128xf32, #tpu.memory_space<vmem>>, %arg3: memref<1x4x128xf32, #tpu.memory_space<vmem>>, %arg4: memref<1x9x128xi8, #tpu.memory_space<vmem>>, %arg5: memref<1x2x128xf32, #tpu.memory_space<vmem>>) attributes {dimension_semantics = [#tpu.dimension_semantics<parallel>, #tpu.dimension_semantics<parallel>], iteration_bounds = array<i64: 2, 2>, scalar_prefetch = 0 : i64, scratch_operands = 0 : i64, tpu.core_type = #tpu.core_type<tc>, window_params = [{transform_indices = @transform_0, window_bounds = array<i64: 1, 4, 128>}, {transform_indices = @transform_1, window_bounds = array<i64: 1, 4, 128>}, {transform_indices = @transform_2, window_bounds = array<i64: 1, 9, 128>}, {transform_indices = @transform_3, window_bounds = array<i64: 1, 2, 128>}]} {
    %c0 = arith.constant 0 : index
    %c0_0 = arith.constant 0 : index
    %c0_1 = arith.constant 0 : index
    %0 = vector.load %arg2[%c0, %c0_0, %c0_1] : memref<1x4x128xf32, #tpu.memory_space<vmem>>, vector<1x4x128xf32>
    %1 = vector.shape_cast %0 : vector<1x4x128xf32> to vector<4x128xf32>
    %c0_2 = arith.constant 0 : index
    %c0_3 = arith.constant 0 : index
    %c0_4 = arith.constant 0 : index
    %2 = vector.load %arg3[%c0_2, %c0_3, %c0_4] : memref<1x4x128xf32, #tpu.memory_space<vmem>>, vector<1x4x128xf32>
    %3 = vector.shape_cast %2 : vector<1x4x128xf32> to vector<4x128xf32>
    %c0_5 = arith.constant 0 : index
    %c0_6 = arith.constant 0 : index
    %c0_7 = arith.constant 0 : index
    %4 = vector.load %arg4[%c0_5, %c0_6, %c0_7] : memref<1x9x128xi8, #tpu.memory_space<vmem>>, vector<1x9x128xi8>
    %5 = vector.shape_cast %4 : vector<1x9x128xi8> to vector<9x128xi8>
    %6 = arith.extsi %5 : vector<9x128xi8> to vector<9x128xi32>
    %7 = tpu.iota {dimensions = array<i32: 0>} : vector<4x128xi32>
    %cst = arith.constant 0.000000e+00 : f32
    %8 = vector.broadcast %cst : f32 to vector<4x128xf32>
    %9 = vector.extract_strided_slice %6 {offsets = [0, 0], sizes = [1, 128], strides = [1, 1]} : vector<9x128xi32> to vector<1x128xi32>
    %10 = vector.broadcast %9 : vector<1x128xi32> to vector<4x128xi32>
    %11 = arith.cmpi eq, %7, %10 : vector<4x128xi32>
    %cst_8 = arith.constant 0.0471925847 : f32
    %cst_9 = arith.constant 0.000000e+00 : f32
    %12 = vector.broadcast %cst_8 : f32 to vector<4x128xf32>
    %13 = vector.broadcast %cst_9 : f32 to vector<4x128xf32>
    %14 = arith.select %11, %12, %13 : vector<4x128xi1>, vector<4x128xf32>
    %15 = arith.addf %8, %14 : vector<4x128xf32>
    %16 = vector.extract_strided_slice %6 {offsets = [1, 0], sizes = [1, 128], strides = [1, 1]} : vector<9x128xi32> to vector<1x128xi32>
    %17 = vector.broadcast %16 : vector<1x128xi32> to vector<4x128xi32>
    %18 = arith.cmpi eq, %7, %17 : vector<4x128xi32>
    %cst_10 = arith.constant 0.077807419 : f32
    %cst_11 = arith.constant 0.000000e+00 : f32
    %19 = vector.broadcast %cst_10 : f32 to vector<4x128xf32>
    %20 = vector.broadcast %cst_11 : f32 to vector<4x128xf32>
    %21 = arith.select %18, %19, %20 : vector<4x128xi1>, vector<4x128xf32>
    %22 = arith.addf %15, %21 : vector<4x128xf32>
    %23 = vector.extract_strided_slice %6 {offsets = [2, 0], sizes = [1, 128], strides = [1, 1]} : vector<9x128xi32> to vector<1x128xi32>
    %24 = vector.broadcast %23 : vector<1x128xi32> to vector<4x128xi32>
    %25 = arith.cmpi eq, %7, %24 : vector<4x128xi32>
    %cst_12 = arith.constant 0.0471925847 : f32
    %cst_13 = arith.constant 0.000000e+00 : f32
    %26 = vector.broadcast %cst_12 : f32 to vector<4x128xf32>
    %27 = vector.broadcast %cst_13 : f32 to vector<4x128xf32>
    %28 = arith.select %25, %26, %27 : vector<4x128xi1>, vector<4x128xf32>
    %29 = arith.addf %22, %28 : vector<4x128xf32>
    %30 = vector.extract_strided_slice %6 {offsets = [3, 0], sizes = [1, 128], strides = [1, 1]} : vector<9x128xi32> to vector<1x128xi32>
    %31 = vector.broadcast %30 : vector<1x128xi32> to vector<4x128xi32>
    %32 = arith.cmpi eq, %7, %31 : vector<4x128xi32>
    %cst_14 = arith.constant 0.077807419 : f32
    %cst_15 = arith.constant 0.000000e+00 : f32
    %33 = vector.broadcast %cst_14 : f32 to vector<4x128xf32>
    %34 = vector.broadcast %cst_15 : f32 to vector<4x128xf32>
    %35 = arith.select %32, %33, %34 : vector<4x128xi1>, vector<4x128xf32>
    %36 = arith.addf %29, %35 : vector<4x128xf32>
    %37 = vector.extract_strided_slice %6 {offsets = [4, 0], sizes = [1, 128], strides = [1, 1]} : vector<9x128xi32> to vector<1x128xi32>
    %38 = vector.broadcast %37 : vector<1x128xi32> to vector<4x128xi32>
    %39 = arith.cmpi eq, %7, %38 : vector<4x128xi32>
    %cst_16 = arith.constant 5.000000e-01 : f32
    %cst_17 = arith.constant 0.000000e+00 : f32
    %40 = vector.broadcast %cst_16 : f32 to vector<4x128xf32>
    %41 = vector.broadcast %cst_17 : f32 to vector<4x128xf32>
    %42 = arith.select %39, %40, %41 : vector<4x128xi1>, vector<4x128xf32>
    %43 = arith.addf %36, %42 : vector<4x128xf32>
    %44 = vector.extract_strided_slice %6 {offsets = [5, 0], sizes = [1, 128], strides = [1, 1]} : vector<9x128xi32> to vector<1x128xi32>
    %45 = vector.broadcast %44 : vector<1x128xi32> to vector<4x128xi32>
    %46 = arith.cmpi eq, %7, %45 : vector<4x128xi32>
    %cst_18 = arith.constant 0.077807419 : f32
    %cst_19 = arith.constant 0.000000e+00 : f32
    %47 = vector.broadcast %cst_18 : f32 to vector<4x128xf32>
    %48 = vector.broadcast %cst_19 : f32 to vector<4x128xf32>
    %49 = arith.select %46, %47, %48 : vector<4x128xi1>, vector<4x128xf32>
    %50 = arith.addf %43, %49 : vector<4x128xf32>
    %51 = vector.extract_strided_slice %6 {offsets = [6, 0], sizes = [1, 128], strides = [1, 1]} : vector<9x128xi32> to vector<1x128xi32>
    %52 = vector.broadcast %51 : vector<1x128xi32> to vector<4x128xi32>
    %53 = arith.cmpi eq, %7, %52 : vector<4x128xi32>
    %cst_20 = arith.constant 0.0471925847 : f32
    %cst_21 = arith.constant 0.000000e+00 : f32
    %54 = vector.broadcast %cst_20 : f32 to vector<4x128xf32>
    %55 = vector.broadcast %cst_21 : f32 to vector<4x128xf32>
    %56 = arith.select %53, %54, %55 : vector<4x128xi1>, vector<4x128xf32>
    %57 = arith.addf %50, %56 : vector<4x128xf32>
    %58 = vector.extract_strided_slice %6 {offsets = [7, 0], sizes = [1, 128], strides = [1, 1]} : vector<9x128xi32> to vector<1x128xi32>
    %59 = vector.broadcast %58 : vector<1x128xi32> to vector<4x128xi32>
    %60 = arith.cmpi eq, %7, %59 : vector<4x128xi32>
    %cst_22 = arith.constant 0.077807419 : f32
    %cst_23 = arith.constant 0.000000e+00 : f32
    %61 = vector.broadcast %cst_22 : f32 to vector<4x128xf32>
    %62 = vector.broadcast %cst_23 : f32 to vector<4x128xf32>
    %63 = arith.select %60, %61, %62 : vector<4x128xi1>, vector<4x128xf32>
    %64 = arith.addf %57, %63 : vector<4x128xf32>
    %65 = vector.extract_strided_slice %6 {offsets = [8, 0], sizes = [1, 128], strides = [1, 1]} : vector<9x128xi32> to vector<1x128xi32>
    %66 = vector.broadcast %65 : vector<1x128xi32> to vector<4x128xi32>
    %67 = arith.cmpi eq, %7, %66 : vector<4x128xi32>
    %cst_24 = arith.constant 0.0471925847 : f32
    %cst_25 = arith.constant 0.000000e+00 : f32
    %68 = vector.broadcast %cst_24 : f32 to vector<4x128xf32>
    %69 = vector.broadcast %cst_25 : f32 to vector<4x128xf32>
    %70 = arith.select %67, %68, %69 : vector<4x128xi1>, vector<4x128xf32>
    %71 = arith.addf %64, %70 : vector<4x128xf32>
    %cst_26 = arith.constant dense<0xFF800000> : vector<128xf32>
    %72 = vector.multi_reduction <maximumf>, %1, %cst_26 [0] : vector<4x128xf32> to vector<128xf32>
    %73 = vector.shape_cast %72 : vector<128xf32> to vector<1x128xf32>
    %74 = vector.broadcast %73 : vector<1x128xf32> to vector<4x128xf32>
    %75 = arith.subf %1, %74 : vector<4x128xf32>
    %76 = math.exp %75 : vector<4x128xf32>
    %cst_27 = arith.constant dense<0.000000e+00> : vector<128xf32>
    %77 = vector.multi_reduction <add>, %76, %cst_27 [0] : vector<4x128xf32> to vector<128xf32>
    %78 = vector.shape_cast %77 : vector<128xf32> to vector<1x128xf32>
    %79 = math.log %78 : vector<1x128xf32>
    %80 = arith.addf %73, %79 : vector<1x128xf32>
    %81 = arith.mulf %71, %1 : vector<4x128xf32>
    %cst_28 = arith.constant dense<0.000000e+00> : vector<128xf32>
    %82 = vector.multi_reduction <add>, %81, %cst_28 [0] : vector<4x128xf32> to vector<128xf32>
    %83 = vector.shape_cast %82 : vector<128xf32> to vector<1x128xf32>
    %84 = arith.subf %80, %83 : vector<1x128xf32>
    %cst_29 = arith.constant 0.666666686 : f32
    %85 = vector.broadcast %cst_29 : f32 to vector<4x128xf32>
    %86 = arith.mulf %3, %85 : vector<4x128xf32>
    %cst_30 = arith.constant dense<0xFF800000> : vector<128xf32>
    %87 = vector.multi_reduction <maximumf>, %86, %cst_30 [0] : vector<4x128xf32> to vector<128xf32>
    %88 = vector.shape_cast %87 : vector<128xf32> to vector<1x128xf32>
    %89 = vector.broadcast %88 : vector<1x128xf32> to vector<4x128xf32>
    %90 = arith.subf %86, %89 : vector<4x128xf32>
    %91 = math.exp %90 : vector<4x128xf32>
    %cst_31 = arith.constant dense<0.000000e+00> : vector<128xf32>
    %92 = vector.multi_reduction <add>, %91, %cst_31 [0] : vector<4x128xf32> to vector<128xf32>
    %93 = vector.shape_cast %92 : vector<128xf32> to vector<1x128xf32>
    %94 = vector.extract_strided_slice %6 {offsets = [4, 0], sizes = [1, 128], strides = [1, 1]} : vector<9x128xi32> to vector<1x128xi32>
    %95 = vector.broadcast %94 : vector<1x128xi32> to vector<4x128xi32>
    %96 = arith.cmpi eq, %7, %95 : vector<4x128xi32>
    %cst_32 = arith.constant 0.000000e+00 : f32
    %97 = vector.broadcast %cst_32 : f32 to vector<4x128xf32>
    %98 = arith.select %96, %91, %97 : vector<4x128xi1>, vector<4x128xf32>
    %cst_33 = arith.constant dense<0.000000e+00> : vector<128xf32>
    %99 = vector.multi_reduction <add>, %98, %cst_33 [0] : vector<4x128xf32> to vector<128xf32>
    %100 = vector.shape_cast %99 : vector<128xf32> to vector<1x128xf32>
    %cst_34 = arith.constant 2.000000e-01 : f32
    %101 = vector.broadcast %cst_34 : f32 to vector<1x128xf32>
    %102 = arith.mulf %101, %93 : vector<1x128xf32>
    %103 = arith.cmpf oge, %100, %102 : vector<1x128xf32>
    %104 = arith.extui %103 : vector<1x128xi1> to vector<1x128xi32>
    %105 = arith.sitofp %104 : vector<1x128xi32> to vector<1x128xf32>
    %c0_35 = arith.constant 0 : index
    %c0_36 = arith.constant 0 : index
    %c0_37 = arith.constant 0 : index
    %106 = vector.load %arg5[%c0_35, %c0_36, %c0_37] : memref<1x2x128xf32, #tpu.memory_space<vmem>>, vector<1x1x128xf32>
    %107 = vector.shape_cast %106 : vector<1x1x128xf32> to vector<1x128xf32>
    %108 = vector.shape_cast %84 : vector<1x128xf32> to vector<1x1x128xf32>
    tpu.vector_store %arg5[%c0_35, %c0_36, %c0_37], %108 {strides = array<i32>} : memref<1x2x128xf32, #tpu.memory_space<vmem>>, vector<1x1x128xf32>,
    %c0_38 = arith.constant 0 : index
    %c1 = arith.constant 1 : index
    %c0_39 = arith.constant 0 : index
    %109 = vector.load %arg5[%c0_38, %c1, %c0_39] : memref<1x2x128xf32, #tpu.memory_space<vmem>>, vector<1x1x128xf32>
    %110 = vector.shape_cast %109 : vector<1x1x128xf32> to vector<1x128xf32>
    %111 = vector.shape_cast %105 : vector<1x128xf32> to vector<1x1x128xf32>
    tpu.vector_store %arg5[%c0_38, %c1, %c0_39], %111 {strides = array<i32>} : memref<1x2x128xf32, #tpu.memory_space<vmem>>, vector<1x1x128xf32>,
    return
  }
  func.func @transform_0(%arg0: i32, %arg1: i32) -> (i32, i32, i32) {
    %c0_i32 = arith.constant 0 : i32
    %c0_i32_0 = arith.constant 0 : i32
    return %arg0, %c0_i32, %arg1 : i32, i32, i32
  }
  func.func @transform_1(%arg0: i32, %arg1: i32) -> (i32, i32, i32) {
    %c0_i32 = arith.constant 0 : i32
    %c0_i32_0 = arith.constant 0 : i32
    return %arg0, %c0_i32, %arg1 : i32, i32, i32
  }
  func.func @transform_2(%arg0: i32, %arg1: i32) -> (i32, i32, i32) {
    %c0_i32 = arith.constant 0 : i32
    %c0_i32_0 = arith.constant 0 : i32
    return %arg0, %c0_i32, %arg1 : i32, i32, i32
  }
  func.func @transform_3(%arg0: i32, %arg1: i32) -> (i32, i32, i32) {
    %c0_i32 = arith.constant 0 : i32
    %c0_i32_0 = arith.constant 0 : i32
    return %arg0, %c0_i32, %arg1 : i32, i32, i32
  }
}

</mosaic_0001>

<bundles_post_ra>
// kernel: tpu_custom_call.1
= control target key start
LH: loop header
LB: loop body
LE: loop exit
PB: predicated region body
PF: predicated region fallthrough
CT: control target
= control target key end

     0   :  { %s1247_s0 = inlined_call_operand.hbm [shape: f32[2,4,256], index: 0, kind: input, shape index: {}]   ;;  %s1248_s1 = inlined_call_operand.hbm [shape: f32[2,4,256], index: 1, kind: input, shape index: {}]   ;;  %s1249_s2 = inlined_call_operand.hbm [shape: s8[2,9,256], index: 2, kind: input, shape index: {}]   ;;  %s1250_s3 = inlined_call_operand.hbm [shape: f32[2,2,256], index: 3, kind: output, shape index: {}]  }
   0x1   :  { %1261 = sst [smem:[#allocation17_spill]] %s1248_s1 }
   0x2   :  { %8 = vsyncpa [#allocation3], 0 }
   0x3   :  { %10 = vsyncpa [#allocation3 + $0x1], 0 }
   0x4   :  { %11 = vsyncpa [#allocation6], 0 }
   0x5   :  { %13 = vsyncpa [#allocation6 + $0x1], 0 }
   0x6   :  { %14 = vsyncpa [#allocation4], 0 }
   0x7   :  { %16 = vsyncpa [#allocation4 + $0x1], 0  ;;  %s910_s12 = smov 0   ;;  %s912_s13 = smov 0  }
   0x8   :  { %s914_s14 = smov 0   ;;  %s916_s15 = smov 0  }
   0x9   :  { %s918_s16 = smov 0   ;;  %s920_s17 = smov 0  }
   0xa   :  { %s922_s18 = smov 0   ;;  %s924_s19 = smov 0  }
   0xb LB: > { %1262 = sst [smem:[#allocation12_spill]] %s872_s17  ;;  %s951_s20 = sadd.s32 4294967295, %s880_s19   ;;  %s880_s19 = sphi %s924_s19, %s22_s19   ;;  %s876_s18 = sphi %s922_s18, %s1286_s18   ;;  %s872_s17 = sphi %s920_s17, %s1285_s17   ;;  %s868_s16 = sphi %s918_s16, %s1284_s16   ;;  %s864_s15 = sphi %s916_s15, %s1283_s15   ;;  %s860_s14 = sphi %s914_s14, %s1289_s14   ;;  %s856_s13 = sphi %s912_s13, %s1288_s13   ;;  %s852_s12 = sphi %s910_s12, %s1287_s12  }
   0xc   : > { %1263 = sst [smem:[#allocation13_spill]] %s876_s18  ;;  %s567_s21 = sadd.s32 4294967294, %s880_s19  }
   0xd   : > { %s31_s22 = sadd.s32 1, %s872_s17  ;;  %s34_s23 = sadd.s32 1, %s876_s18 }
   0xe   : > { %p32_p0 = scmp.ge.s32.totalorder %s31_s22, 2  ;;  %s43_s24 = sadd.s32 1, %s860_s14 }
   0xf   : > { %p50_p1 = scmp.ne.s32.totalorder %s860_s14, %s856_s13  ;;  %p51_p2 = scmp.eq.s32.totalorder %s880_s19, 0 }
  0x10   : > { %s1291_s22 = smov (%p32_p0, %s31_s22), 0  ;;  %s1293_s23 = smov (!%p32_p0, %s34_s23), %s876_s18 }
  0x11   : > { %1264 = sst [smem:[#allocation14_spill]] %s1291_s22  ;;  %s39_s25 = ssub.s32 %s872_s17, %s1291_s22 }
  0x12   : > { %p965_p3 = por %p51_p2, %p50_p1  ;;  %p36_p4 = scmp.ge.s32.totalorder %s1293_s23, 2 }
  0x13   : > { %p56_p5 = scmp.ne.s32.totalorder %s856_s13, %s852_s12  ;;  %p57_p6 = scmp.eq.s32.totalorder %s951_s20, 0 }
  0x14   : > { %p138_p7 = scmp.eq.s32.totalorder %s951_s20, 3  ;;  %s1295_s23 = smov (%p36_p4, %s1293_s23), 0 }
  0x15   : > { %1266 = sst [smem:[#allocation15_spill]] %s1295_s23  ;;  %p975_p8 = por %p57_p6, %p56_p5 }
  0x16   : > { %p979_p9 = por %p138_p7, %p50_p1  ;;  %s38_s29 = ssub.s32 %s876_s18, %s1295_s23 }
  0x17   : > { %s1267_s27 = scalar_select %p975_p8, 1, 0 }
  0x18   : > { %s1268_s28 = scalar_select %p979_p9, 1, 0 }
  0x19   : > { %p144_p10 = scmp.eq.s32.totalorder %s567_s21, 3  ;;  %s40_s30 = sor.u32 %s39_s25, %s38_s29 }
  0x1a   : > { %p41_p11 = scmp.eq.s32.totalorder %s40_s30, 0  ;;  %p612_p13 = scmp.lt.s32.totalorder %s880_s19, 4 }
  0x1b   : > { %p985_p12 = por %p144_p10, %p56_p5  ;;  %s1251_s5 = sand.u32 1, %s860_s14  }
  0x1c   : > { %s992_s6 = scalar_select %p41_p11, %s860_s14, %s43_s24  }
  0x1d   : > { %s1269_s4 = scalar_select %p985_p12, 1, 0 }
  0x1e   : > { %1270 = sst [smem:[#allocation16_spill]] %s992_s6  ;;  %s996_s7 = sshll.u32 %s1251_s5, 2 }
  0x1f   : > { %s571_s8 = sshll.u32 %s876_s18, 1  ;;  %p1004_p0 = pnand %p612_p13, %p965_p3 }
  0x20   : > { %s1000_s9 = sadd.s32 %s872_s17, %s571_s8  ;;  %s184_s21 = sand.u32 1, %s880_s19  }
  0x21   : > { %s1271_s10 = scalar_select %p1004_p0, 1, 0 }
  0x22   : > { %s1254_s11 = sshll.u32 %s1000_s9, 6  ;;  %s1272_s1 = sld [smem:[#allocation17_spill]] }
  0x23   : > { %s188_s26 = scalar_lea.vmem [#allocation5], %s996_s7  ;;  %s577_s8 = sshll.u32 %s876_s18, 2 }
  0x24   : > { %s197_s30 = sshll.u32 %s188_s26, 4  ;;  %s1021_s5 = scalar_lea.sflag [#allocation6], %s184_s21  ;;  %s1018_s30 = int_to_ptr.vmem [resolvable:$true] %s197_s30 }
  0x25   : > { %p1027_p2 = pneg %p1004_p0 }
  0x28   : > { %s1015_s29 = scalar_lea.hbm %s1272_s1, %s1254_s11  ;;  %s693_s26 = scalar_lea.hbm %s1272_s1, 256 }
  0x29   : > { %s688_s23 = scalar_lea.hbm %s1015_s29, 64  ;;  %p694_p5 = scmp.lt.u32.totalorder %s1015_s29, %s1272_s1 }
  0x2a   : > { %p689_p1 = scmp.ne.s32.totalorder %s1015_s29, %s688_s23  ;;  %p695_p6 = scmp.lt.u32.totalorder %s693_s26, %s688_s23 }
  0x2b   : > { %p697_p10 = scmp.lt.u32.totalorder %s688_s23, %s1015_s29 }
  0x2c   : > { %p691_p3 = pnand %p1027_p2, %p689_p1  ;;  %p696_p7 = por %p695_p6, %p694_p5 }
  0x2e   : > { %p692_p4 = pneg %p691_p3  ;;  %p698_p11 = por %p697_p10, %p696_p7 }
  0x30   : > { %p699_p13 = pnand %p698_p11, %p692_p4 }
  0x32   : > { %702 = shalt.err (!%p699_p13)
}
  0x33   : > { %s703_s21 = scalar_lea.vmem %s1018_s30, 64  ;;  %s882_s24 = smov [#allocation5]  }
  0x34   : > { %p704_p1 = scmp.ne.s32.totalorder %s1018_s30, %s703_s21  ;;  %s708_s25 = sshll.u32 %s882_s24, 4  ;;  %s709_s25 = int_to_ptr.vmem [resolvable:$false] %s708_s25 }
  0x35   : > { %s710_s6 = scalar_lea.vmem %s709_s25, 128  ;;  %p711_p9 = scmp.lt.s32.totalorder %s1018_s30, %s709_s25 }
  0x36   : > { %p706_p3 = pnand %p704_p1, %p1027_p2  ;;  %p712_p8 = scmp.lt.s32.totalorder %s710_s6, %s703_s21 }
  0x38   : > { %p707_p12 = pneg %p706_p3  ;;  %p713_p5 = por %p712_p8, %p711_p9 }
  0x3a   : > { %p714_p6 = pnand %p713_p5, %p707_p12 }
  0x3c   : > { %717 = shalt.err (!%p714_p6)
}
  0x3d   : > { %604 = dma.hbm_to_vmem [thread:$0]  (!%p1004_p0), %s1015_s29, 64, %s1018_s30, %s1021_s5  }
  0x3e   : > { %s213_s23 = sadd.s32 %s872_s17, %s577_s8  ;;  %s208_s11 = scalar_lea.vmem [#allocation7], %s996_s7 }
  0x3f   : > { %s216_s26 = sshll.u32 %s208_s11, 4  ;;  %s578_s21 = sshll.u32 %s213_s23, 5  ;;  %s1055_s26 = int_to_ptr.vmem [resolvable:$true] %s216_s26 }
  0x40   : > { %s1060_s6 = scalar_lea.hbm %s1249_s2, %s578_s21  ;;  %p579_p8 = scmp.ge.s32.totalorder %s880_s19, 1 }
  0x41   : > { %p224_p9 = scmp.lt.s32.totalorder %s880_s19, 5  ;;  %s1275_s29 = sshll.u32 %s1000_s9, 6 }
  0x42   : > { %s1073_s18 = scalar_lea.hbm %s1247_s0, %s1275_s29  ;;  %s168_s23 = scalar_lea.vmem [#allocation2], %s996_s7 }
  0x43   : > { %p1064_p12 = pnand %p579_p8, %p224_p9  ;;  %s177_s11 = sshll.u32 %s168_s23, 4  ;;  %s178_s11 = int_to_ptr.vmem [resolvable:$true] %s177_s11 }
  0x44   : > { %s1276_s21 = sand.u32 1, %s860_s14   ;;  %s718_s25 = scalar_lea.hbm %s1073_s18, 64 }
  0x45   : > { %s1274_s1 = scalar_select %p1064_p12, 1, 0 }
  0x46   : > { %s165_s24 = scalar_lea.sflag [#allocation3], %s1276_s21  ;;  %p719_p4 = scmp.ne.s32.totalorder %s1073_s18, %s718_s25 }
  0x47   : > { %s723_s30 = scalar_lea.hbm %s1247_s0, 256  ;;  %p724_p11 = scmp.lt.u32.totalorder %s1073_s18, %s1247_s0 }
  0x48   : > { %p721_p7 = pnand %p719_p4, %p1027_p2  ;;  %p725_p13 = scmp.lt.u32.totalorder %s723_s30, %s718_s25 }
  0x49   : > { %p727_p3 = scmp.lt.u32.totalorder %s718_s25, %s1073_s18 }
  0x4a   : > { %p722_p10 = pneg %p721_p7  ;;  %p726_p1 = por %p725_p13, %p724_p11 }
  0x4c   : > { %p728_p5 = por %p727_p3, %p726_p1 }
  0x4e   : > { %p729_p6 = pnand %p728_p5, %p722_p10 }
  0x50   : > { %732 = shalt.err (!%p729_p6)
}
  0x51   : > { %s733_s7 = scalar_lea.vmem %s178_s11, 64  ;;  %s883_s23 = smov [#allocation2]  }
  0x52   : > { %p734_p8 = scmp.ne.s32.totalorder %s178_s11, %s733_s7  ;;  %s738_s21 = sshll.u32 %s883_s23, 4  ;;  %s739_s21 = int_to_ptr.vmem [resolvable:$false] %s738_s21 }
  0x53   : > { %s740_s17 = scalar_lea.vmem %s739_s21, 128  ;;  %p741_p7 = scmp.lt.s32.totalorder %s178_s11, %s739_s21 }
  0x54   : > { %p736_p9 = pnand %p734_p8, %p1027_p2  ;;  %p742_p12 = scmp.lt.s32.totalorder %s740_s17, %s733_s7 }
  0x56   : > { %p737_p4 = pneg %p736_p9  ;;  %p743_p0 = por %p742_p12, %p741_p7 }
  0x58   : > { %p744_p11 = pnand %p743_p0, %p737_p4 }
  0x5a   : > { %747 = shalt.err (!%p744_p11)
}
  0x5b   : > { %p1277_p13 = scmp.ne.s32.totalorder %s1271_s10, 0  ;;  %s748_s25 = scalar_lea.hbm %s1060_s6, 64 }
  0x5c   : > { %p749_p10 = scmp.ne.s32.totalorder %s1060_s6, %s748_s25  ;;  %s753_s29 = scalar_lea.hbm %s1249_s2, 256 }
  0x5d   : > { %601 = dma.hbm_to_vmem [thread:$0]  (!%p1277_p13), %s1073_s18, 64, %s178_s11, %s165_s24  }
  0x5e   : > { %p751_p1 = pnand %p749_p10, %p1027_p2  ;;  %p754_p0 = scmp.lt.u32.totalorder %s1060_s6, %s1249_s2 }
  0x5f   : > { %p755_p12 = scmp.lt.u32.totalorder %s753_s29, %s748_s25  ;;  %p757_p6 = scmp.lt.u32.totalorder %s748_s25, %s1060_s6 }
  0x60   : > { %p752_p3 = pneg %p751_p1 }
  0x61   : > { %p756_p5 = por %p755_p12, %p754_p0 }
  0x63   : > { %p758_p8 = por %p757_p6, %p756_p5 }
  0x65   : > { %p759_p9 = pnand %p758_p8, %p752_p3 }
  0x67   : > { %762 = shalt.err (!%p759_p9)
}
  0x68   : > { %s763_s18 = scalar_lea.vmem %s1055_s26, 64  ;;  %s884_s11 = smov [#allocation7]  }
  0x69   : > { %p764_p4 = scmp.ne.s32.totalorder %s1055_s26, %s763_s18  ;;  %s768_s24 = sshll.u32 %s884_s11, 4  ;;  %s769_s24 = int_to_ptr.vmem [resolvable:$false] %s768_s24 }
  0x6a   : > { %s770_s23 = scalar_lea.vmem %s769_s24, 128  ;;  %p771_p10 = scmp.lt.s32.totalorder %s1055_s26, %s769_s24 }
  0x6b   : > { %p766_p7 = pnand %p764_p4, %p1027_p2  ;;  %p772_p1 = scmp.lt.s32.totalorder %s770_s23, %s763_s18 }
  0x6d   : > { %p767_p11 = pneg %p766_p7  ;;  %p773_p0 = por %p772_p1, %p771_p10 }
  0x6f   : > { %p774_p12 = pnand %p773_p0, %p767_p11 }
  0x71   : > { %777 = shalt.err (!%p774_p12)
}
  0x72   : > { %s885_s21 = smov 64   ;;  %s886_s17 = smov 32  }
  0x73   : > { %s887_s25 = smov 2   ;;  %p1278_p2 = scmp.ne.s32.totalorder %s1274_s1, 0 }
  0x74   : > { %607 = dma.hbm_to_vmem [thread:$0]  (!%p1277_p13), %s1060_s6, 64, %s1055_s26, %s1021_s5, %s885_s21, %s886_s17, %s887_s25  }
  0x75   : > { %228 = sbr.rel (%p1278_p2) target bundleno = 206 (0xce), region = 32  ;;  %s1120_s22 = sand.u32 (!%p1278_p2), 1, %s856_s13  }
  0x76   : > { %s1123_s9 = sshll.u32 (!%p1278_p2), %s1120_s22, 2  ;;  %s231_s30 = scalar_lea.sflag (!%p1278_p2), [#allocation3], %s1120_s22 }
  0x77   : > { %s234_s29 = scalar_lea.vmem (!%p1278_p2), [#allocation2], %s1123_s9  ;;  %p1279_p3 = scmp.ne.s32.totalorder (!%p1278_p2), %s1267_s27, 0 }
  0x7c   : > { %839 = dma.done.wait (%p1279_p3), %s231_s30, 64  }
  0x7d   : > { %841 = vsyncadd (%p1279_p3), %s231_s30, 4294967232  ;;  %s239_s1 = sand.u32 1, %s951_s20   ;;  %s243_s10 = scalar_lea.vmem [#allocation5], %s1123_s9 }
  0x7e   : > { %s240_s5 = scalar_lea.sflag [#allocation6], %s239_s1 }
  0x7f   : > { %843 = dma.done.wait (%p1279_p3), %s240_s5, 128  }
  0x80   : > { %845 = vsyncadd (%p1279_p3), %s240_s5, 4294967168  ;;  %v291_v0 = vlaneseq  ;;  %vm356_vm0 = vcmask 1043456   ;;  %v1143_v6 = vld [vmem:[%s234_s29] sm:$0xf]  ;;  %s252_s20 = scalar_lea.vmem [#allocation7], %s1123_s9  ;;  %v888_v22 = vmov 0.0  }
  0x81   : > { %v287_v7 = vld [vmem:[%s252_s20] sm:$0x3]  ;;  %v357_v11 = vsel %vm356_vm0, %v1143_v6, -inf  ;;  %v286_v12 = vld [vmem:[%s243_s10] sm:$0xf]  ;;  %s583_s27 = sshll.u32 %s1120_s22, 1 }
  0x82   : > { %v1137_v1 = vshrl.u32 %v291_v0, 7  ;;  %v289_v10 = vunpack.c.0.s8 %v287_v7  ;;  %v358_v20 = vrot.slane %v357_v11, 4  ;;  %v386_v21 = vmul.f32 0.6666667, %v286_v12  ;;  %v288_v29 = vld [vmem:[%s252_s20 + $0x2] sm:$0x1] }
  0x83   : > { %v290_v38 = vunpack.c.0.s8 %v288_v29  ;;  %s586_s26 = sshll.u32 %s868_s16, 1  ;;  %s284_s6 = scalar_lea.vmem [#allocation8], %s583_s27 }
  0x84   : > { %v295_v2 = vsub.s32 0, %v1137_v1  ;;  %v302_v3 = vsub.s32 1, %v1137_v1  ;;  %v309_v4 = vsub.s32 2, %v1137_v1  ;;  %v316_v5 = vsub.s32 3, %v1137_v1  ;;  %s430_s8 = sadd.s32 %s864_s15, %s586_s26  ;;  %s434_s7 = sshll.u32 %s284_s6, 4  ;;  %s1190_s7 = int_to_ptr.vmem [resolvable:$true] %s434_s7 }
  0x85   : > { %v323_v8 = vsub.s32 4, %v1137_v1  ;;  %v330_v9 = vsub.s32 5, %v1137_v1  ;;  %v337_v13 = vsub.s32 6, %v1137_v1  ;;  %v344_v28 = vsub.s32 7, %v1137_v1  ;;  %s587_s18 = sshll.u32 %s430_s8, 5  ;;  %s419_s23 = scalar_lea.sflag [#allocation4], %s1120_s22 }
  0x86   : > { %v296_v14 = vrot.slane %v289_v10, %v295_v2  ;;  %v303_v15 = vrot.slane %v289_v10, %v302_v3  ;;  %v310_v16 = vrot.slane %v289_v10, %v309_v4  ;;  %v317_v17 = vrot.slane %v289_v10, %v316_v5  ;;  %s1195_s16 = scalar_lea.hbm %s1250_s3, %s587_s18  ;;  %s778_s15 = scalar_lea.vmem %s1190_s7, 32 }
  0x87   : > { %v1151_v18 = vrot.slane %v289_v10, %v323_v8  ;;  %v331_v19 = vrot.slane %v289_v10, %v330_v9  ;;  %v338_v31 = vrot.slane %v289_v10, %v337_v13  ;;  %v359_v32 = vmax.f32 %v357_v11, %v358_v20  ;;  %p779_p13 = scmp.ne.s32.totalorder %s1190_s7, %s778_s15  ;;  %p1280_p5 = scmp.ne.s32.totalorder %s1268_s28, 0 }
  0x88   : > { %vm297_vm1 = vcmp.eq.s32.totalorder %v1137_v1, %v296_v14  ;;  %vm304_vm2 = vcmp.eq.s32.totalorder %v1137_v1, %v303_v15  ;;  %vm311_vm3 = vcmp.eq.s32.totalorder %v1137_v1, %v310_v16  ;;  %vm318_vm4 = vcmp.eq.s32.totalorder %v1137_v1, %v317_v17  ;;  %s889_s21 = smov [#allocation8]  }
  0x89   : > { %v298_v23 = vsel %vm297_vm1, 0.047192585, %v888_v22  ;;  %v305_v24 = vsel %vm304_vm2, 0.07780742, %v888_v22  ;;  %v312_v25 = vsel %vm311_vm3, 0.047192585, %v888_v22  ;;  %vm325_vm5 = vcmp.eq.s32.totalorder %v1137_v1, %v1151_v18  ;;  %p780_p6 = pnand %p779_p13, %p1280_p5 }
  0x8a   : > { %v306_v26 = vadd.f32 %v305_v24, %v298_v23  ;;  %v319_v27 = vsel %vm318_vm4, 0.07780742, %v888_v22  ;;  %vm332_vm6 = vcmp.eq.s32.totalorder %v1137_v1, %v331_v19  ;;  %v326_v33 = vsel %vm325_vm5, 0.5, %v888_v22  ;;  %s782_s17 = sshll.u32 %s889_s21, 4  ;;  %s783_s17 = int_to_ptr.vmem [resolvable:$false] %s782_s17 }
  0x8b   : > { %v387_v34 = vsel %vm356_vm0, %v386_v21, -inf  ;;  %v360_v36 = vrot.slane %v359_v32, 2  ;;  %v333_v39 = vsel %vm332_vm6, 0.07780742, %v888_v22  ;;  %v345_v40 = vrot.slane %v289_v10, %v344_v28  ;;  %p781_p8 = pneg %p780_p6  ;;  %s784_s25 = scalar_lea.vmem %s783_s17, 64 }
  0x8c   : > { %v313_v30 = vadd.f32 %v312_v25, %v306_v26  ;;  %v388_v37 = vrot.slane %v387_v34, 4  ;;  %vm339_vm7 = vcmp.eq.s32.totalorder %v1137_v1, %v338_v31  ;;  %v352_v48 = vrot.slane %v290_v38, %v295_v2  ;;  %p785_p9 = scmp.lt.s32.totalorder %s1190_s7, %s783_s17  ;;  %p786_p4 = scmp.lt.s32.totalorder %s784_s25, %s778_s15 }
  0x8d   : > { %v361_v42 = vmax.f32 %v359_v32, %v360_v36  ;;  %v340_v47 = vsel %vm339_vm7, 0.047192585, %v888_v22  ;;  %vm346_vm8 = vcmp.eq.s32.totalorder %v1137_v1, %v345_v40 }
  0x8e   : > { %v320_v35 = vadd.f32 %v319_v27, %v313_v30  ;;  %v389_v43 = vmax.f32 %v387_v34, %v388_v37  ;;  %v347_v54 = vsel %vm346_vm8, 0.07780742, %v888_v22  ;;  %vm353_vm9 = vcmp.eq.s32.totalorder %v1137_v1, %v352_v48  ;;  %p787_p7 = por %p786_p4, %p785_p9 }
  0x8f   : > { %v362_v45 = vrot.slane %v361_v42, 1  ;;  %v354_v59 = vsel %vm353_vm9, 0.047192585, %v888_v22 }
  0x90   : > { %v327_v41 = vadd.f32 %v326_v33, %v320_v35  ;;  %v390_v46 = vrot.slane %v389_v43, 2  ;;  %p788_p11 = pnand %p787_p7, %p781_p8 }
  0x91   : > { %v363_v49 = vmax.f32 %v361_v42, %v362_v45 }
  0x92   : > { %v334_v44 = vadd.f32 %v333_v39, %v327_v41  ;;  %v391_v50 = vmax.f32 %v389_v43, %v390_v46 }
  0x93   : > { %v364_v52 = vsub.f32 %v1143_v6, %v363_v49 }
  0x94   : > { %v341_v51 = vadd.f32 %v340_v47, %v334_v44  ;;  %v392_v53 = vrot.slane %v391_v50, 1 }
  0x95   : > { %v365_v55 = vmul.f32 1.442695, %v364_v52 }
  0x96   : > { %v393_v56 = vmax.f32 %v391_v50, %v392_v53  ;;  %v348_v57 = vadd.f32 %v347_v54, %v341_v51 }
  0x97   : > { %682 = vpow2.f32 %v365_v55 }
  0x98   : > { %v394_v58 = vsub.f32 %v386_v21, %v393_v56  ;;  %v355_v61 = vadd.f32 %v354_v59, %v348_v57 }
  0x9a   : > { %v395_v60 = vmul.f32 1.442695, %v394_v58  ;;  %v377_v62 = vmul.f32 %v355_v61, %v1143_v6 }
  0x9c   : > { %684 = vpow2.f32 %v395_v60  ;;  %v378_v3 = vsel %vm356_vm0, %v377_v62, 0.0 }
  0x9d   : > { %v379_v7 = vrot.slane %v378_v3, 4 }
  0x9f   : > { %v380_v15 = vadd.f32 %v379_v7, %v378_v3 }
  0xa1   : > { %v683_v63 = vpop.eup %682  ;;  %v381_v24 = vrot.slane %v380_v15, 2 }
  0xa2   : > { %v367_v0 = vsel %vm356_vm0, %v683_v63, 0.0 }
  0xa3   : > { %v368_v2 = vrot.slane %v367_v0, 4  ;;  %v382_v27 = vadd.f32 %v381_v24, %v380_v15 }
  0xa5   : > { %v369_v5 = vadd.f32 %v368_v2, %v367_v0  ;;  %v383_v30 = vrot.slane %v382_v27, 1 }
  0xa6   : > { %v685_v4 = vpop.eup %684 }
  0xa7   : > { %v397_v8 = vsel %vm356_vm0, %v685_v4, 0.0  ;;  %v404_v9 = vsel %vm325_vm5, %v685_v4, 0.0  ;;  %v370_v10 = vrot.slane %v369_v5, 2  ;;  %v384_v34 = vadd.f32 %v383_v30, %v382_v27 }
  0xa8   : > { %v398_v11 = vrot.slane %v397_v8, 4  ;;  %v405_v12 = vsel %vm356_vm0, %v404_v9, 0.0 }
  0xa9   : > { %v406_v6 = vrot.slane %v405_v12, 4  ;;  %v371_v13 = vadd.f32 %v370_v10, %v369_v5 }
  0xaa   : > { %v399_v14 = vadd.f32 %v398_v11, %v397_v8 }
  0xab   : > { %v407_v16 = vadd.f32 %v406_v6, %v405_v12  ;;  %v372_v17 = vrot.slane %v371_v13, 1 }
  0xac   : > { %v400_v19 = vrot.slane %v399_v14, 2 }
  0xad   : > { %v408_v20 = vrot.slane %v407_v16, 2  ;;  %v373_v21 = vadd.f32 %v372_v17, %v371_v13 }
  0xae   : > { %v401_v23 = vadd.f32 %v400_v19, %v399_v14 }
  0xaf   : > { %v409_v1 = vadd.f32 %v408_v20, %v407_v16  ;;  %686 = vlog2.f32 %v373_v21 }
  0xb0   : > { %v402_v18 = vrot.slane %v401_v23, 1 }
  0xb1   : > { %v410_v25 = vrot.slane %v409_v1, 1 }
  0xb2   : > { %v403_v26 = vadd.f32 %v402_v18, %v401_v23 }
  0xb3   : > { %v411_v28 = vadd.f32 %v410_v25, %v409_v1 }
  0xb4   : > { %v412_v29 = vmul.f32 0.2, %v403_v26 }
  0xb6   : > { %vm413_vm10 = vcmp.ge.f32.partialorder %v411_v28, %v412_v29 }
  0xb7   : > { %v584_v31 = vsel %vm413_vm10, 1.0, %v888_v22 }
  0xb8   : > { %417 = vst [vmem:[%s284_s6 + $0x1] sm:$0x1] %v584_v31 }
  0xb9   : > { %v687_v32 = vpop.eup %686 }
  0xba   : > { %v375_v33 = vmul.f32 0.6931472, %v687_v32 }
  0xbc   : > { %v376_v35 = vadd.f32 %v375_v33, %v363_v49 }
  0xbe   : > { %v385_v36 = vsub.f32 %v376_v35, %v384_v34 }
  0xc0   : > { %416 = vst [vmem:[%s284_s6] sm:$0x1] %v385_v36 }
  0xc1   : > { %791 = shalt.err (!%p788_p11)
}
  0xc2   : > { %s792_s22 = scalar_lea.hbm %s1195_s16, 32  ;;  %s796_s29 = scalar_lea.hbm %s1250_s3, 128 }
  0xc3   : > { %p793_p10 = scmp.ne.s32.totalorder %s1195_s16, %s792_s22  ;;  %p797_p12 = scmp.lt.u32.totalorder %s1195_s16, %s1250_s3 }
  0xc4   : > { %p798_p2 = scmp.lt.u32.totalorder %s796_s29, %s792_s22  ;;  %p800_p13 = scmp.lt.u32.totalorder %s792_s22, %s1195_s16 }
  0xc5   : > { %p794_p1 = pnand %p793_p10, %p1280_p5 }
  0xc6   : > { %p799_p3 = por %p798_p2, %p797_p12 }
  0xc7   : > { %p795_p0 = pneg %p794_p1 }
  0xc8   : > { %p801_p6 = por %p800_p13, %p799_p3 }
  0xca   : > { %p802_p8 = pnand %p801_p6, %p795_p0 }
  0xcc   : > { %805 = shalt.err (!%p802_p8)
}
  0xcd   : > { %596 = dma.vmem_to_hbm [thread:$0]  (%p1280_p5), %s1190_s7, 32, %s1195_s16, %s419_s23  }
  0xce PF: > { %p613_p9 = scmp.ge.s32.totalorder %s880_s19, 2  ;;  %s446_s10 = sand.u32 1, %s852_s12  }
  0xcf   : > { %p1281_p4 = scmp.ne.s32.totalorder %s1269_s4, 0  ;;  %s447_s20 = scalar_lea.sflag [#allocation4], %s446_s10 }
  0xd1   : > { %p609_p7 = pnand %p613_p9, %p1281_p4 }
  0xd3   : > { %847 = dma.done.wait (!%p609_p7), %s447_s20, 32  }
  0xd4   : > { %849 = vsyncadd (!%p609_p7), %s447_s20, 4294967264  ;;  %s22_s19 = sadd.s32 1, %s880_s19   ;;  %s1282_s28 = sld [smem:[#allocation16_spill]] }
  0xd5   : > { %p19_p11 = scmp.ge.s32.totalorder %s22_s19, 6   ;;  %s1283_s15 = sld [smem:[#allocation12_spill]] }
  0xd6   : > { %s1284_s16 = sld [smem:[#allocation13_spill]]  ;;  %s1285_s17 = sld [smem:[#allocation14_spill]] }
  0xd7   : > { %s1286_s18 = sld [smem:[#allocation15_spill]]  ;;  %s1287_s12 = smov %s856_s13 }
  0xd8   : > { %s1288_s13 = smov %s860_s14  ;;  %21 = sbr.rel (!%p19_p11) target bundleno = 11 (0xb), region = 101 }
  0xda   : > { %s1289_s14 = smov %s1282_s28 }
  0xdf   :  { %452 = vsyncpa [#allocation3], 1 }
  0xe0   :  { %454 = vsyncpa [#allocation3 + $0x1], 1 }
  0xe1   :  { %455 = vsyncpa [#allocation6], 1 }
  0xe2   :  { %457 = vsyncpa [#allocation6 + $0x1], 1 }
  0xe3   :  { %458 = vsyncpa [#allocation4], 1 }
  0xe4   :  { %460 = vsyncpa [#allocation4 + $0x1], 1 }

</bundles_post_ra>
